<compile_context>
chip_gen: v7x
topology: tpu7x:2x2x1
jax: 0.10.0
libtpu: 0.0.40
codegen_flags: <defaults>
</compile_context>

<pallas_src>
import functools

import jax
import jax.numpy as jnp
from jax.experimental import pallas as pl
from jax.experimental.pallas import tpu as pltpu


def _round_up(x: int, m: int) -> int:
    return ((x + m - 1) // m) * m


def _linear_skip_kernel(x_ref, wf_ref, b1_ref, w2_ref, bo_ref, o_ref):
    n_pad = o_ref.shape[-1]  # padded output width; skip block is fused[:, :n_pad]

    x = x_ref[...]                                                    # (TB, n_in) bf16

    # Single MXU pass over x produces [0.5 * skip | pre-activation hidden].
    fused = jnp.dot(x, wf_ref[...], preferred_element_type=jnp.float32)

    skip = fused[:, :n_pad]                                           # (TB, n_pad) f32
    # b1 only on the hidden slice; ReLU in f32, then bf16 for the second MXU pass.
    h = jnp.maximum(fused[:, n_pad:] + b1_ref[...], 0.0).astype(w2_ref.dtype)

    # Second MXU pass (0.5 already folded into W2); one combined bias add.
    out = jnp.dot(h, w2_ref[...], preferred_element_type=jnp.float32)
    out = out + skip + bo_ref[...]
    o_ref[...] = out.astype(o_ref.dtype)                              # bf16 stores


def prepare_linear_skip_params(w1, b1, w2, b2, ws, bs):
    """One-time weight preparation (call at module init, not per forward).

    Folds the 0.5 scaling into Ws / W2, combines the two output biases, pads
    hidden and output dims to 128 lanes, fuses [0.5*Ws | W1] along the output
    axis so x hits the MXU once, and casts the MXU operands to bf16.
    """
    n_in, hidden = w1.shape
    n_out = ws.shape[1]
    n_pad = _round_up(n_out, 128)   # lane-dense output / skip block width
    h_pad = _round_up(hidden, 128)  # full-MXU contraction for the second matmul
    f32, bf16 = jnp.float32, jnp.bfloat16

    # Zero-pad hidden (exact: relu(0) = 0 and the padded W2 rows are zero).
    w1_p = jnp.pad(w1, ((0, 0), (0, h_pad - hidden)))
    b1_p = jnp.pad(jnp.reshape(b1, (1, -1)), ((0, 0), (0, h_pad - hidden))).astype(f32)

    # Zero-pad outputs and fold the 0.5 scale into the weights / bias.
    ws_p = jnp.pad(0.5 * ws, ((0, 0), (0, n_pad - n_out)))
    w2_p = jnp.pad(0.5 * w2, ((0, h_pad - hidden), (0, n_pad - n_out)))
    bo_p = jnp.pad(jnp.reshape(0.5 * (b2 + bs), (1, -1)),
                   ((0, 0), (0, n_pad - n_out))).astype(f32)

    # Fuse the two x-consuming matmuls: [0.5*skip | hidden] along the output
    # axis; both in-kernel slices start on a 128-lane boundary.
    wf = jnp.concatenate([ws_p, w1_p], axis=1).astype(bf16)   # (n_in, n_pad + h_pad)
    w2_c = w2_p.astype(bf16)                                   # (h_pad, n_pad)

    return {"wf": wf, "b1": b1_p, "w2": w2_c, "bo": bo_p, "n_out": n_out}


@functools.partial(jax.jit, static_argnames=("n_out",))
def _linear_skip_forward(x, wf, b1, w2, bo, *, n_out):
    batch, n_in = x.shape
    n_pad = bo.shape[1]
    bf16 = jnp.bfloat16

    # Batch tiling: target up to 1024 rows/tile (amortize ~0.35 us per grid
    # step on v5e/v6e) but keep >= 2 tiles so the "parallel" axis shards
    # across both v7x TensorCores.
    tb = max(8, min(1024, _round_up(pl.cdiv(batch, 2), 8)))
    n_tiles = pl.cdiv(batch, tb)
    bpad = n_tiles * tb

    x_c = x.astype(bf16)
    if bpad != batch:
        x_c = jnp.pad(x_c, ((0, bpad - batch), (0, 0)))

    out = pl.pallas_call(
        _linear_skip_kernel,
        out_shape=jax.ShapeDtypeStruct((bpad, n_pad), bf16),   # bf16 writeback
        grid=(n_tiles,),
        in_specs=[
            pl.BlockSpec((tb, n_in), lambda i: (i, 0)),   # streamed x tiles
            pl.BlockSpec(wf.shape, lambda i: (0, 0)),     # resident fused weights
            pl.BlockSpec(b1.shape, lambda i: (0, 0)),     # resident hidden bias
            pl.BlockSpec(w2.shape, lambda i: (0, 0)),     # resident 2nd-layer weights
            pl.BlockSpec(bo.shape, lambda i: (0, 0)),     # resident combined out bias
        ],
        out_specs=pl.BlockSpec((tb, n_pad), lambda i: (i, 0)),
        compiler_params=pltpu.CompilerParams(
            dimension_semantics=("parallel",),   # shard batch tiles across TCs
            vmem_limit_bytes=64 * 1024 * 1024,
        ),
    )(x_c, wf, b1, w2, bo)

    return out[:batch, :n_out]


def linear_skip_connection(x, params):
    """0.5 * MLP(x) + 0.5 * (x @ ws + bs) with pre-prepared params (bf16 out)."""
    return _linear_skip_forward(x, params["wf"], params["b1"], params["w2"],
                                params["bo"], n_out=params["n_out"])


def _init_linear(key, fan_in, fan_out):
    # PyTorch nn.Linear default init: U(-1/sqrt(fan_in), 1/sqrt(fan_in))
    kw, kb = jax.random.split(key)
    bound = 1.0 / jnp.sqrt(fan_in)
    w = jax.random.uniform(kw, (fan_in, fan_out), jnp.float32, -bound, bound)
    b = jax.random.uniform(kb, (fan_out,), jnp.float32, -bound, bound)
    return w, b


if __name__ == "__main__":
    batch, n_inputs, hidden, n_outputs = 512, 32, 64, 16

    key = jax.random.PRNGKey(0)
    kx, k1, k2, ks = jax.random.split(key, 4)

    x = jax.random.normal(kx, (batch, n_inputs), jnp.float32)
    w1, b1 = _init_linear(k1, n_inputs, hidden)     # network layer 1
    w2, b2 = _init_linear(k2, hidden, n_outputs)    # network layer 2
    ws, bs = _init_linear(ks, n_inputs, n_outputs)  # linear skip connection

    # One-time prep (module init); hot path is just the jitted kernel call.
    params = prepare_linear_skip_params(w1, b1, w2, b2, ws, bs)
    jax.block_until_ready(params)

    out = linear_skip_connection(x, params)
    jax.block_until_ready(out)

    # Reference in plain f32 JAX.  The kernel uses bf16 MXU operands with f32
    # accumulation and a bf16 output, hence the loosened tolerance.
    net_ref = jnp.maximum(x @ w1 + b1, 0.0) @ w2 + b2
    ref = 0.5 * net_ref + 0.5 * (x @ ws + bs)
    assert out.shape == (batch, n_outputs)
    assert jnp.allclose(out.astype(jnp.float32), ref, atol=5e-2, rtol=5e-2), float(
        jnp.max(jnp.abs(out.astype(jnp.float32) - ref)))

    print("KERNEL_OK")
</pallas_src>

<mosaic_0001>
module attributes {stable_mosaic.version = 11 : i64} {
  func.func @_linear_skip_kernel(%arg0: i32, %arg1: memref<256x32xbf16, #tpu.memory_space<vmem>>, %arg2: memref<32x256xbf16, #tpu.memory_space<vmem>>, %arg3: memref<1x128xf32, #tpu.memory_space<vmem>>, %arg4: memref<128x128xbf16, #tpu.memory_space<vmem>>, %arg5: memref<1x128xf32, #tpu.memory_space<vmem>>, %arg6: memref<256x128xbf16, #tpu.memory_space<vmem>>) attributes {dimension_semantics = [#tpu.dimension_semantics<parallel>], iteration_bounds = array<i64: 2>, scalar_prefetch = 0 : i64, scratch_operands = 0 : i64, tpu.core_type = #tpu.core_type<tc>, window_params = [{transform_indices = @transform_0, window_bounds = array<i64: 256, 32>}, {pipeline_mode = #tpu.pipeline_mode<synchronous>, transform_indices = @transform_1, window_bounds = array<i64: 32, 256>}, {pipeline_mode = #tpu.pipeline_mode<synchronous>, transform_indices = @transform_2, window_bounds = array<i64: 1, 128>}, {pipeline_mode = #tpu.pipeline_mode<synchronous>, transform_indices = @transform_3, window_bounds = array<i64: 128, 128>}, {pipeline_mode = #tpu.pipeline_mode<synchronous>, transform_indices = @transform_4, window_bounds = array<i64: 1, 128>}, {transform_indices = @transform_5, window_bounds = array<i64: 256, 128>}]} {
    %c0 = arith.constant 0 : index
    %c0_0 = arith.constant 0 : index
    %0 = vector.load %arg1[%c0, %c0_0] : memref<256x32xbf16, #tpu.memory_space<vmem>>, vector<256x32xbf16>
    %c0_1 = arith.constant 0 : index
    %c0_2 = arith.constant 0 : index
    %1 = vector.load %arg2[%c0_1, %c0_2] : memref<32x256xbf16, #tpu.memory_space<vmem>>, vector<32x256xbf16>
    %cst = arith.constant dense<0.000000e+00> : vector<256x256xf32>
    %2 = tpu.matmul %0, %1, %cst {dimension_numbers = #tpu.dot_dimension_numbers<[1], [0], [0], [1], [0, 0, 1, 1], [], []>} : vector<256x32xbf16>, vector<32x256xbf16>, vector<256x256xf32> -> vector<256x256xf32>
    %3 = vector.extract_strided_slice %2 {offsets = [0, 0], sizes = [256, 128], strides = [1, 1]} : vector<256x256xf32> to vector<256x128xf32>
    %4 = vector.extract_strided_slice %2 {offsets = [0, 128], sizes = [256, 128], strides = [1, 1]} : vector<256x256xf32> to vector<256x128xf32>
    %c0_3 = arith.constant 0 : index
    %c0_4 = arith.constant 0 : index
    %5 = vector.load %arg3[%c0_3, %c0_4] : memref<1x128xf32, #tpu.memory_space<vmem>>, vector<1x128xf32>
    %6 = vector.broadcast %5 : vector<1x128xf32> to vector<256x128xf32>
    %7 = arith.addf %4, %6 : vector<256x128xf32>
    %cst_5 = arith.constant 0.000000e+00 : f32
    %8 = vector.broadcast %cst_5 : f32 to vector<256x128xf32>
    %9 = arith.maximumf %7, %8 : vector<256x128xf32>
    %10 = arith.truncf %9 : vector<256x128xf32> to vector<256x128xbf16>
    %c0_6 = arith.constant 0 : index
    %c0_7 = arith.constant 0 : index
    %11 = vector.load %arg4[%c0_6, %c0_7] : memref<128x128xbf16, #tpu.memory_space<vmem>>, vector<128x128xbf16>
    %cst_8 = arith.constant dense<0.000000e+00> : vector<256x128xf32>
    %12 = tpu.matmul %10, %11, %cst_8 {dimension_numbers = #tpu.dot_dimension_numbers<[1], [0], [0], [1], [0, 0, 1, 1], [], []>} : vector<256x128xbf16>, vector<128x128xbf16>, vector<256x128xf32> -> vector<256x128xf32>
    %13 = arith.addf %12, %3 : vector<256x128xf32>
    %c0_9 = arith.constant 0 : index
    %c0_10 = arith.constant 0 : index
    %14 = vector.load %arg5[%c0_9, %c0_10] : memref<1x128xf32, #tpu.memory_space<vmem>>, vector<1x128xf32>
    %15 = vector.broadcast %14 : vector<1x128xf32> to vector<256x128xf32>
    %16 = arith.addf %13, %15 : vector<256x128xf32>
    %17 = arith.truncf %16 : vector<256x128xf32> to vector<256x128xbf16>
    %c0_11 = arith.constant 0 : index
    %c0_12 = arith.constant 0 : index
    %18 = vector.load %arg6[%c0_11, %c0_12] : memref<256x128xbf16, #tpu.memory_space<vmem>>, vector<256x128xbf16>
    tpu.vector_store %arg6[%c0_11, %c0_12], %17 {strides = array<i32>} : memref<256x128xbf16, #tpu.memory_space<vmem>>, vector<256x128xbf16>,
    return
  }
  func.func @transform_0(%arg0: i32) -> (i32, i32) {
    %c0_i32 = arith.constant 0 : i32
    %c0_i32_0 = arith.constant 0 : i32
    return %arg0, %c0_i32 : i32, i32
  }
  func.func @transform_1(%arg0: i32) -> (i32, i32) {
    %c0_i32 = arith.constant 0 : i32
    %c0_i32_0 = arith.constant 0 : i32
    %c0_i32_1 = arith.constant 0 : i32
    return %c0_i32, %c0_i32_0 : i32, i32
  }
  func.func @transform_2(%arg0: i32) -> (i32, i32) {
    %c0_i32 = arith.constant 0 : i32
    %c0_i32_0 = arith.constant 0 : i32
    %c0_i32_1 = arith.constant 0 : i32
    return %c0_i32, %c0_i32_0 : i32, i32
  }
  func.func @transform_3(%arg0: i32) -> (i32, i32) {
    %c0_i32 = arith.constant 0 : i32
    %c0_i32_0 = arith.constant 0 : i32
    %c0_i32_1 = arith.constant 0 : i32
    return %c0_i32, %c0_i32_0 : i32, i32
  }
  func.func @transform_4(%arg0: i32) -> (i32, i32) {
    %c0_i32 = arith.constant 0 : i32
    %c0_i32_0 = arith.constant 0 : i32
    %c0_i32_1 = arith.constant 0 : i32
    return %c0_i32, %c0_i32_0 : i32, i32
  }
  func.func @transform_5(%arg0: i32) -> (i32, i32) {
    %c0_i32 = arith.constant 0 : i32
    %c0_i32_0 = arith.constant 0 : i32
    return %arg0, %c0_i32 : i32, i32
  }
}

</mosaic_0001>

<bundles_post_ra>
// kernel: _linear_skip_forward.1
= control target key start
LH: loop header
LB: loop body
LE: loop exit
PB: predicated region body
PF: predicated region fallthrough
CT: control target
= control target key end

     0   :  { %10 = vsyncpa [#allocation3], 0  ;;  %s2541_s0 = inlined_call_operand.hbm [shape: bf16[512,32], index: 0, kind: input, shape index: {}]   ;;  %s2542_s1 = inlined_call_operand.hbm [shape: bf16[32,256], index: 1, kind: input, shape index: {}]   ;;  %s2543_s2 = inlined_call_operand.hbm [shape: f32[1,128], index: 2, kind: input, shape index: {}]   ;;  %s2544_s3 = inlined_call_operand.hbm [shape: bf16[128,128], index: 3, kind: input, shape index: {}]   ;;  %s2545_s4 = inlined_call_operand.hbm [shape: f32[1,128], index: 4, kind: input, shape index: {}]   ;;  %s2546_s5 = inlined_call_operand.hbm [shape: bf16[512,128], index: 5, kind: output, shape index: {}]  }
   0x1   :  { %12 = vsyncpa [#allocation3 + $0x1], 0 }
   0x2   :  { %13 = vsyncpa [#allocation6], 0 }
   0x3   :  { %14 = vsyncpa [#allocation9], 0 }
   0x4   :  { %15 = vsyncpa [#allocation4], 0 }
   0x5   :  { %17 = vsyncpa [#allocation4 + $0x1], 0  ;;  %s2004_s18 = smov 0   ;;  %s2006_s19 = smov 0  }
   0x6   :  { %s2008_s20 = smov 0   ;;  %s2010_s21 = smov 0  }
   0x7 LB: > { %s2025_s22 = sadd.s32 4294967295, %s1959_s21   ;;  %s1314_s23 = sadd.s32 4294967294, %s1959_s21   ;;  %s1959_s21 = sphi %s2010_s21, %s2569_s21   ;;  %s1955_s20 = sphi %s2008_s20, %s2568_s20   ;;  %s1951_s19 = sphi %s2006_s19, %s2567_s19   ;;  %s1947_s18 = sphi %s2004_s18, %s2566_s18  }
   0x8   : > { %p43_p0 = scmp.ne.s32.totalorder %s1951_s19, %s1947_s18  ;;  %p2547_p1 = scmp.eq.s32.totalorder %s2025_s22, 0 }
   0x9   : > { %p157_p3 = scmp.eq.s32.totalorder %s1314_s23, 1  ;;  %p1315_p5 = scmp.ge.s32.totalorder %s1959_s21, 1 }
   0xa   : > { %p2034_p4 = por %p2547_p1, %p43_p0  ;;  %p164_p7 = scmp.lt.s32.totalorder %s1959_s21, 3 }
   0xb   : > { %p2039_p6 = por %p157_p3, %p43_p0  ;;  %s1961_s27 = smov [#allocation5]  }
   0xc   : > { %s2550_s24 = scalar_select %p2034_p4, 1, 0 }
   0xd   : > { %s2551_s25 = scalar_select %p2039_p6, 1, 0 }
   0xe   : > { %p2044_p8 = pnand %p1315_p5, %p164_p7  ;;  %s176_s28 = sshll.u32 %s1961_s27, 4  ;;  %s2048_s28 = int_to_ptr.vmem [resolvable:$true] %s176_s28 }
   0xf   : > { %s1962_s30 = smov [#allocation8]   ;;  %s1743_s9 = scalar_lea.hbm %s2542_s1, 512 }
  0x10   : > { %s2552_s26 = scalar_select %p2044_p8, 1, 0 }
  0x11   : > { %p1639_p9 = pneg %p2044_p8  ;;  %s200_s6 = sshll.u32 %s1962_s30, 4  ;;  %s2059_s6 = int_to_ptr.vmem [resolvable:$true] %s200_s6 }
  0x12   : > { %p1744_p12 = scmp.ne.s32.totalorder %s2542_s1, %s1743_s9  ;;  %p1750_p5 = scmp.lt.u32.totalorder %s1743_s9, %s2542_s1 }
  0x13   : > { %p2055_p11 = pnand %p1639_p9, %p2547_p1 }
  0x15   : > { %p2069_p13 = pneg %p2055_p11 }
  0x17   : > { %p1746_p0 = pnand %p2069_p13, %p1744_p12 }
  0x19   : > { %p1747_p3 = pneg %p1746_p0 }
  0x1b   : > { %p1752_p7 = pnand %p1750_p5, %p1747_p3 }
  0x1d   : > { %1755 = shalt.err (!%p1752_p7)
}
  0x1e   : > { %s1756_s15 = scalar_lea.vmem %s2048_s28, 512  ;;  %p1764_p2 = scmp.lt.s32.totalorder %s2048_s28, %s2048_s28 }
  0x1f   : > { %p1757_p9 = scmp.ne.s32.totalorder %s2048_s28, %s1756_s15  ;;  %p1765_p6 = scmp.lt.s32.totalorder %s1756_s15, %s1756_s15 }
  0x21   : > { %p1759_p10 = pnand %p1757_p9, %p2069_p13  ;;  %p1766_p12 = por %p1765_p6, %p1764_p2 }
  0x23   : > { %p1760_p1 = pneg %p1759_p10 }
  0x25   : > { %p1767_p0 = pnand %p1766_p12, %p1760_p1 }
  0x27   : > { %1770 = shalt.err (!%p1767_p0)
}
  0x28   : > { %s1963_s16 = smov 128   ;;  %s1964_s17 = smov 8  }
  0x29   : > { %1642 = dma.hbm_to_vmem [thread:$0]  (!%p2055_p11), %s2542_s1, 512, %s2048_s28, [#allocation6], %s1963_s16, %s1963_s16, %s1964_s17  }
  0x2a   : > { %s1771_s8 = scalar_lea.hbm %s2544_s3, 1024 }
  0x2b   : > { %p1772_p2 = scmp.ne.s32.totalorder %s2544_s3, %s1771_s8  ;;  %p1778_p10 = scmp.lt.u32.totalorder %s1771_s8, %s2544_s3 }
  0x2d   : > { %p1774_p1 = pnand %p1772_p2, %p2069_p13 }
  0x2f   : > { %p1775_p6 = pneg %p1774_p1 }
  0x31   : > { %p1780_p3 = pnand %p1778_p10, %p1775_p6 }
  0x33   : > { %1783 = shalt.err (!%p1780_p3)
}
  0x34   : > { %s1784_s28 = scalar_lea.vmem %s2059_s6, 1024  ;;  %p1792_p12 = scmp.lt.s32.totalorder %s2059_s6, %s2059_s6 }
  0x35   : > { %p1785_p5 = scmp.ne.s32.totalorder %s2059_s6, %s1784_s28  ;;  %p1793_p0 = scmp.lt.s32.totalorder %s1784_s28, %s1784_s28 }
  0x37   : > { %p1787_p7 = pnand %p1785_p5, %p2069_p13  ;;  %p1794_p2 = por %p1793_p0, %p1792_p12 }
  0x39   : > { %p1788_p9 = pneg %p1787_p7 }
  0x3b   : > { %p1795_p1 = pnand %p1794_p2, %p1788_p9 }
  0x3d   : > { %1798 = shalt.err (!%p1795_p1)
}
  0x3e   : > { %s1965_s14 = smov 64   ;;  %s1966_s15 = smov 4  }
  0x3f   : > { %1648 = dma.hbm_to_vmem [thread:$0]  (!%p2055_p11), %s2544_s3, 1024, %s2059_s6, [#allocation9], %s1965_s14, %s1965_s14, %s1966_s15  }
  0x40   : > { %s1967_s23 = smov [#allocation7]   ;;  %s1968_s30 = smov [#allocation10]  }
  0x41   : > { %s190_s27 = sshll.u32 %s1967_s23, 4  ;;  %s214_s7 = sshll.u32 %s1968_s30, 4  ;;  %s191_s27 = int_to_ptr.vmem [resolvable:$true] %s190_s27  ;;  %s2116_s7 = int_to_ptr.vmem [resolvable:$true] %s214_s7 }
  0x42   : > { %s1799_s10 = scalar_lea.hbm %s2543_s2, 16 }
  0x43   : > { %p1800_p6 = scmp.ne.s32.totalorder %s2543_s2, %s1799_s10  ;;  %p1806_p5 = scmp.lt.u32.totalorder %s1799_s10, %s2543_s2 }
  0x45   : > { %p1802_p10 = pnand %p1800_p6, %p2069_p13 }
  0x47   : > { %p1803_p3 = pneg %p1802_p10 }
  0x49   : > { %p1808_p7 = pnand %p1806_p5, %p1803_p3 }
  0x4b   : > { %1811 = shalt.err (!%p1808_p7)
}
  0x4c   : > { %s1812_s16 = scalar_lea.vmem %s191_s27, 16  ;;  %s1819_s17 = scalar_lea.vmem %s191_s27, 32 }
  0x4d   : > { %p1813_p9 = scmp.ne.s32.totalorder %s191_s27, %s1812_s16  ;;  %p1820_p2 = scmp.lt.s32.totalorder %s191_s27, %s191_s27 }
  0x4e   : > { %p1821_p1 = scmp.lt.s32.totalorder %s1819_s17, %s1812_s16 }
  0x4f   : > { %p1815_p12 = pnand %p1813_p9, %p2069_p13 }
  0x50   : > { %p1822_p4 = por %p1821_p1, %p1820_p2 }
  0x51   : > { %p1816_p0 = pneg %p1815_p12 }
  0x53   : > { %p1823_p8 = pnand %p1822_p4, %p1816_p0 }
  0x55   : > { %1826 = shalt.err (!%p1823_p8)
}
  0x56   : > { %1645 = dma.hbm_to_vmem [thread:$0]  (!%p2055_p11), %s2543_s2, 16, %s191_s27, [#allocation6]  }
  0x57   : > { %s1827_s10 = scalar_lea.hbm %s2545_s4, 16 }
  0x58   : > { %p1828_p6 = scmp.ne.s32.totalorder %s2545_s4, %s1827_s10  ;;  %p1834_p4 = scmp.lt.u32.totalorder %s1827_s10, %s2545_s4 }
  0x5a   : > { %p1830_p10 = pnand %p1828_p6, %p2069_p13 }
  0x5c   : > { %p1831_p3 = pneg %p1830_p10 }
  0x5e   : > { %p1836_p8 = pnand %p1834_p4, %p1831_p3 }
  0x60   : > { %1839 = shalt.err (!%p1836_p8)
}
  0x61   : > { %s1840_s27 = scalar_lea.vmem %s2116_s7, 16  ;;  %s1847_s16 = scalar_lea.vmem %s2116_s7, 32 }
  0x62   : > { %p1841_p5 = scmp.ne.s32.totalorder %s2116_s7, %s1840_s27  ;;  %p1848_p12 = scmp.lt.s32.totalorder %s2116_s7, %s2116_s7 }
  0x63   : > { %p1849_p0 = scmp.lt.s32.totalorder %s1847_s16, %s1840_s27 }
  0x64   : > { %p1843_p7 = pnand %p1841_p5, %p2069_p13 }
  0x65   : > { %p1850_p2 = por %p1849_p0, %p1848_p12 }
  0x66   : > { %p1844_p9 = pneg %p1843_p7 }
  0x68   : > { %p1851_p1 = pnand %p1850_p2, %p1844_p9 }
  0x6a   : > { %1854 = shalt.err (!%p1851_p1)
}
  0x6b   : > { %1651 = dma.hbm_to_vmem [thread:$0]  (!%p2055_p11), %s2545_s4, 16, %s2116_s7, [#allocation9]  }
  0x6c   : > { %s2161_s12 = sadd.s32 1, %s1959_s21   ;;  %s30_s30 = sadd.s32 1, %s1955_s20 }
  0x6d   : > { %s27_s29 = ssub.s32 %s1959_s21, %s2161_s12  ;;  %p37_p6 = scmp.ne.s32.totalorder %s1955_s20, %s1951_s19 }
  0x6e   : > { %p28_p13 = scmp.eq.s32.totalorder %s27_s29, 0  ;;  %p38_p10 = scmp.eq.s32.totalorder %s1959_s21, 0 }
  0x6f   : > { %p2555_p4 = scmp.eq.s32.totalorder %s2025_s22, 1  ;;  %p1664_p5 = scmp.lt.s32.totalorder %s1959_s21, 2 }
  0x70   : > { %s2170_s8 = scalar_select %p28_p13, %s1955_s20, %s30_s30  }
  0x71   : > { %p39_p3 = por %p38_p10, %p37_p6  ;;  %p2174_p8 = por %p2555_p4, %p37_p6 }
  0x72   : > { %s225_s10 = sand.u32 1, %s1955_s20   ;;  %s1414_s7 = sshll.u32 %s1959_s21, 11 }
  0x73   : > { %s1321_s11 = sshll.u32 %s225_s10, 7  ;;  %s2184_s6 = scalar_lea.hbm %s2541_s0, %s1414_s7 }
  0x74   : > { %s229_s27 = scalar_lea.vmem [#allocation2], %s1321_s11  ;;  %p2188_p11 = pnand %p1664_p5, %p39_p3 }
  0x75   : > { %s236_s16 = sshll.u32 %s229_s27, 4  ;;  %s2192_s23 = scalar_lea.sflag [#allocation3], %s225_s10  ;;  %s2186_s16 = int_to_ptr.vmem [resolvable:$true] %s236_s16 }
  0x76   : > { %s1855_s29 = scalar_lea.hbm %s2184_s6, 2048  ;;  %p1857_p9 = pneg %p2188_p11 }
  0x77   : > { %p1856_p7 = scmp.ne.s32.totalorder %s2184_s6, %s1855_s29  ;;  %s1860_s7 = scalar_lea.hbm %s2541_s0, 4096 }
  0x78   : > { %p1861_p2 = scmp.lt.u32.totalorder %s2184_s6, %s2541_s0  ;;  %p1862_p1 = scmp.lt.u32.totalorder %s1860_s7, %s1855_s29 }
  0x79   : > { %p1858_p12 = pnand %p1857_p9, %p1856_p7  ;;  %p1864_p6 = scmp.lt.u32.totalorder %s1855_s29, %s2184_s6 }
  0x7a   : > { %p1863_p13 = por %p1862_p1, %p1861_p2 }
  0x7b   : > { %p1859_p0 = pneg %p1858_p12 }
  0x7c   : > { %p1865_p10 = por %p1864_p6, %p1863_p13 }
  0x7e   : > { %p1866_p3 = pnand %p1865_p10, %p1859_p0 }
  0x80   : > { %1869 = shalt.err (!%p1866_p3)
}
  0x81   : > { %s1870_s10 = scalar_lea.vmem %s2186_s16, 2048  ;;  %s1969_s27 = smov [#allocation2]  }
  0x82   : > { %p1871_p4 = scmp.ne.s32.totalorder %s2186_s16, %s1870_s10  ;;  %s1875_s30 = sshll.u32 %s1969_s27, 4  ;;  %s1876_s30 = int_to_ptr.vmem [resolvable:$false] %s1875_s30 }
  0x83   : > { %s1877_s11 = scalar_lea.vmem %s1876_s30, 4096  ;;  %p1878_p12 = scmp.lt.s32.totalorder %s2186_s16, %s1876_s30 }
  0x84   : > { %p1873_p5 = pnand %p1871_p4, %p1857_p9  ;;  %p1879_p2 = scmp.lt.s32.totalorder %s1877_s11, %s1870_s10 }
  0x86   : > { %p1874_p7 = pneg %p1873_p5  ;;  %p1880_p1 = por %p1879_p2, %p1878_p12 }
  0x88   : > { %p1881_p13 = pnand %p1880_p1, %p1874_p7 }
  0x8a   : > { %1884 = shalt.err (!%p1881_p13)
}
  0x8b   : > { %1655 = dma.hbm_to_vmem [thread:$0]  (!%p2188_p11), %s2184_s6, 2048, %s2186_s16, %s2192_s23, %s1965_s14, %s1965_s14, %s1966_s15  }
  0x8c   : > { %p2558_p9 = scmp.ne.s32.totalorder %s2552_s26, 0 }
  0x8d   : > { %s2226_s29 = sand.u32 (!%p2558_p9), 1, %s1951_s19   ;;  %p2559_p0 = scmp.ne.s32.totalorder (!%p2558_p9), %s2550_s24, 0 }
  0x8e   : > { %248 = sbr.rel (%p2558_p9) target bundleno = 728 (0x2d8), region = 40  ;;  %s1325_s7 = sshll.u32 (!%p2558_p9), %s2226_s29, 7 }
  0x8f   : > { %s251_s13 = scalar_lea.sflag (!%p2558_p9), [#allocation3], %s2226_s29  ;;  %s2232_s17 = scalar_lea.vmem (!%p2558_p9), [#allocation2], %s1325_s7 }
  0x95   : > { %1930 = dma.done.wait (%p2559_p0), %s251_s13, 2048  }
  0x96   : > { %1932 = vsyncadd (%p2559_p0), %s251_s13, 4294965248  ;;  %p2560_p11 = scmp.eq.s32.totalorder %s2025_s22, 0 }
  0x98   : > { %1934 = dma.done.wait (%p2560_p11), [#allocation6], 528   ;;  %p2561_p6 = pmov %p2560_p11 }
  0x9a   : > { %1936 = vsyncadd (%p2561_p6), [#allocation6], 4294966768  ;;  %p2562_p10 = pmov %p2561_p6 }
  0x9b   : > { %p2563_p3 = pmov %p2561_p6 }
  0x9c   : > { %1938 = dma.done.wait (%p2562_p10), [#allocation9], 1040  }
  0x9d   : > { %1940 = vsyncadd (%p2563_p3), [#allocation9], 4294966256  ;;  %v1970_v0 = vmov 0   ;;  %v1713_v1 = vld [vmem:[#allocation5 + $0x4] ss:$8 sps:$4 sm:$0xff]   ;;  %vm436_vm0 = vcmask 261120  }
  0x9e   : > { %517 = vmatprep.mubr.bf16.mxu0 %v1970_v0  ;;  %637 = vmatprep.mubr.bf16.mxu1 %v1970_v0  ;;  %v1715_v2 = vld [vmem:[#allocation5] ss:$8 sps:$4 sm:$0xff]   ;;  %v1716_v3 = vld [vmem:[#allocation5 + $0x14] ss:$8 sps:$4 sm:$0xff]   ;;  %v1718_v4 = vld [vmem:[#allocation5 + $0x10] ss:$8 sps:$4 sm:$0xff]  }
  0x9f   : > { %485 = vmatprep.subr.bf16.mxu0 %v1713_v1  ;;  %1615 = vmatprep.subr.bf16.mxu1 %v1713_v1  ;;  %v1719_v5 = vld [vmem:[%s2232_s17] sm:$0xff]   ;;  %v1720_v7 = vld [vmem:[%s2232_s17 + $0x8] sm:$0xff]   ;;  %v1721_v11 = vld [vmem:[%s2232_s17 + $0x10] sm:$0xff]   ;;  %s2416_s24 = scalar_lea.vmem [#allocation11], %s1325_s7  ;;  %s1447_s26 = sshll.u32 %s2025_s22, 11 }
  0xa0   : > { %486 = vmatpush1.bf16.msra.mxu0 %v1715_v2  ;;  %1617 = vmatpush1.bf16.msra.mxu1 %v1715_v2  ;;  %v1729_v6 = vld [vmem:[%s2232_s17 + $0x60] sm:$0xff]   ;;  %v1731_v8 = vld [vmem:[%s2232_s17 + $0x68] sm:$0xff]   ;;  %v1737_v12 = vld [vmem:[#allocation8 + $0x10] sm:$0xff]   ;;  %s1203_s14 = sshll.u32 %s2416_s24, 4  ;;  %s2493_s16 = scalar_lea.hbm %s2546_s5, %s1447_s26  ;;  %s2495_s14 = int_to_ptr.vmem [resolvable:$true] %s1203_s14 }
  0xa1   : > { %487 = vmatprep.subr.bf16.mxu0 %v1716_v3  ;;  %1616 = vmatprep.subr.bf16.mxu1 %v1716_v3  ;;  %v1735_v9 = vld [vmem:[#allocation8] sm:$0xff]   ;;  %v1736_v10 = vld [vmem:[#allocation8 + $0x8] sm:$0xff]   ;;  %v1738_v14 = vld [vmem:[#allocation8 + $0x18] sm:$0xff]   ;;  %s1190_s22 = scalar_lea.sflag [#allocation4], %s2226_s29  ;;  %s1885_s23 = scalar_lea.vmem %s2495_s14, 2048 }
  0xa2   : > { %v1733_v13 = vld [vmem:[%s2232_s17 + $0x70] sm:$0xff]   ;;  %v1722_v15 = vld [vmem:[%s2232_s17 + $0x18] sm:$0xff]   ;;  %v1723_v17 = vld [vmem:[%s2232_s17 + $0x20] sm:$0xff]   ;;  %p1886_p4 = scmp.ne.s32.totalorder %s2495_s14, %s1885_s23  ;;  %s1971_s28 = smov [#allocation11]  }
  0xa3   : > { %v1734_v16 = vld [vmem:[%s2232_s17 + $0x78] sm:$0xff]   ;;  %v1724_v18 = vld [vmem:[%s2232_s17 + $0x28] sm:$0xff]   ;;  %v1725_v19 = vld [vmem:[%s2232_s17 + $0x30] sm:$0xff]   ;;  %s1889_s10 = sshll.u32 %s1971_s28, 4  ;;  %s1890_s10 = int_to_ptr.vmem [resolvable:$false] %s1889_s10 }
  0xa4   : > { %488 = vmatpush1.bf16.msra.mxu0 %v1718_v4  ;;  %1618 = vmatpush1.bf16.msra.mxu1 %v1718_v4  ;;  %v1726_v20 = vld [vmem:[%s2232_s17 + $0x38] sm:$0xff]   ;;  %v1727_v21 = vld [vmem:[%s2232_s17 + $0x40] sm:$0xff]   ;;  %v1728_v22 = vld [vmem:[%s2232_s17 + $0x48] sm:$0xff]   ;;  %p1887_p5 = pnand %p1886_p4, %p2174_p8  ;;  %s1891_s27 = scalar_lea.vmem %s1890_s10, 4096 }
  0xa5   : > { %1567 = vmatprep.subr.bf16.mxu1 %v1735_v9  ;;  %v1730_v23 = vld [vmem:[%s2232_s17 + $0x50] sm:$0xff]   ;;  %v1739_v24 = vld [vmem:[#allocation8 + $0x20] sm:$0xff]   ;;  %v1732_v25 = vld [vmem:[%s2232_s17 + $0x58] sm:$0xff]   ;;  %p1892_p12 = scmp.lt.s32.totalorder %s2495_s14, %s1890_s10  ;;  %p1893_p2 = scmp.lt.s32.totalorder %s1891_s27, %s1885_s23 }
  0xa6   : > { %v1740_v26 = vld [vmem:[#allocation8 + $0x28] sm:$0xff]   ;;  %v1741_v27 = vld [vmem:[#allocation8 + $0x30] sm:$0xff]   ;;  %v1742_v28 = vld [vmem:[#allocation8 + $0x38] sm:$0xff]   ;;  %p1888_p7 = pneg %p1887_p5 }
  0xa7   : > { %1351 = vmatmul.mubr.msk.bf16.vlgmr.msra.gmra.mrb[0].mxu0 %vm436_vm0, %v1719_v5  ;;  %1363 = vmatmul.mubr.msk.bf16.vlgmr.msra.gmra.mrb[0].mxu1 %vm436_vm0, %v1729_v6  ;;  %v2294_v29 = vld [vmem:[#allocation7] ss:$0 sm:$0xff]  ;;  %p1894_p1 = por %p1893_p2, %p1892_p12 }
  0xa8   : > { %527 = vmatprep.mubr.bf16.mxu0 %v1970_v0  ;;  %647 = vmatprep.mubr.bf16.mxu1 %v1970_v0 }
  0xa9   : > { %1568 = vmatpush3.bf16.msra.mxu1 %v1735_v9  ;;  %p1895_p13 = pnand %p1894_p1, %p1888_p7 }
  0xaa   : > { %1569 = vmatprep.subr.bf16.mxu1 %v1736_v10 }
  0xad   : > { %1570 = vmatpush3.bf16.msra.mxu1 %v1736_v10 }
  0xae   : > { %1571 = vmatprep.subr.bf16.mxu1 %v1737_v12 }
  0xaf   : > { %1352 = vmatmul.mubr.msk.bf16.gmra.mrb[4].mxu0 %vm436_vm0, %v1720_v7  ;;  %1364 = vmatmul.mubr.msk.bf16.gmra.mrb[4].mxu1 %vm436_vm0, %v1731_v8 }
  0xb0   : > { %537 = vmatprep.mubr.bf16.mxu0 %v1970_v0  ;;  %657 = vmatprep.mubr.bf16.mxu1 %v1970_v0 }
  0xb1   : > { %1572 = vmatpush3.bf16.msra.mxu1 %v1737_v12 }
  0xb2   : > { %1573 = vmatprep.subr.bf16.mxu1 %v1738_v14 }
  0xb5   : > { %1574 = vmatpush3.bf16.msra.mxu1 %v1738_v14 }
  0xb6   : > { %1575 = vmatprep.subr.bf16.mxu1 %v1739_v24 }
  0xb7   : > { %1353 = vmatmul.mubr.msk.bf16.gmra.mrb[8].mxu0 %vm436_vm0, %v1721_v11  ;;  %1365 = vmatmul.mubr.msk.bf16.gmra.mrb[8].mxu1 %vm436_vm0, %v1733_v13 }
  0xb8   : > { %547 = vmatprep.mubr.bf16.mxu0 %v1970_v0  ;;  %667 = vmatprep.mubr.bf16.mxu1 %v1970_v0 }
  0xb9   : > { %1576 = vmatpush3.bf16.msra.mxu1 %v1739_v24 }
  0xba   : > { %1577 = vmatprep.subr.bf16.mxu1 %v1740_v26 }
  0xbd   : > { %1578 = vmatpush3.bf16.msra.mxu1 %v1740_v26 }
  0xbe   : > { %1579 = vmatprep.subr.bf16.mxu1 %v1741_v27 }
  0xbf   : > { %1354 = vmatmul.mubr.msk.bf16.gmra.mrb[12].mxu0 %vm436_vm0, %v1722_v15  ;;  %1366 = vmatmul.mubr.msk.bf16.gmra.mrb[12].mxu1 %vm436_vm0, %v1734_v16 }
  0xc0   : > { %557 = vmatprep.mubr.bf16.mxu0 %v1970_v0 }
  0xc1   : > { %1580 = vmatpush3.bf16.msra.mxu1 %v1741_v27 }
  0xc2   : > { %1581 = vmatprep.subr.bf16.mxu1 %v1742_v28 }
  0xc5   : > { %1582 = vmatpush3.bf16.msra.mxu1 %v1742_v28 }
  0xc7   : > { %1355 = vmatmul.mubr.msk.bf16.gmra.mrb[16].mxu0 %vm436_vm0, %v1723_v17 }
  0xc8   : > { %567 = vmatprep.mubr.bf16.mxu0 %v1970_v0 }
  0xcf   : > { %1356 = vmatmul.mubr.msk.bf16.gmra.mrb[20].mxu0 %vm436_vm0, %v1724_v18 }
  0xd0   : > { %577 = vmatprep.mubr.bf16.mxu0 %v1970_v0 }
  0xd7   : > { %1357 = vmatmul.mubr.msk.bf16.gmra.mrb[24].mxu0 %vm436_vm0, %v1725_v19 }
  0xd8   : > { %587 = vmatprep.mubr.bf16.mxu0 %v1970_v0 }
  0xdf   : > { %1358 = vmatmul.mubr.msk.bf16.gmra.mrb[28].mxu0 %vm436_vm0, %v1726_v20 }
  0xe0   : > { %597 = vmatprep.mubr.bf16.mxu0 %v1970_v0 }
  0xe7   : > { %1359 = vmatmul.mubr.msk.bf16.gmra.mrb[32].mxu0 %vm436_vm0, %v1727_v21 }
  0xe8   : > { %607 = vmatprep.mubr.bf16.mxu0 %v1970_v0 }
  0xef   : > { %1360 = vmatmul.mubr.msk.bf16.gmra.mrb[36].mxu0 %vm436_vm0, %v1728_v22 }
  0xf0   : > { %617 = vmatprep.mubr.bf16.mxu0 %v1970_v0 }
  0xf7   : > { %1361 = vmatmul.mubr.msk.bf16.gmra.mrb[40].mxu0 %vm436_vm0, %v1730_v23 }
  0xf8   : > { %627 = vmatprep.mubr.bf16.mxu0 %v1970_v0 }
  0xff   : > { %1362 = vmatmul.mubr.msk.bf16.gmra.mrb[44].mxu0 %vm436_vm0, %v1732_v25 }
 0x17a   : > { %v2296_v30 = vpop.f32.mrb[0].mxu0  ;;  %v2302_v36 = vpop.f32.mrb[0].mxu1 }
 0x17b   : > { %v521_v31 = vpop.f32.mrb[1].mxu0  ;;  %v641_v39 = vpop.f32.mrb[1].mxu1 }
 0x17c   : > { %v685_v32 = vadd.f32 %v2294_v29, %v521_v31  ;;  %v2299_v33 = vpop.f32.mrb[2].mxu0  ;;  %v709_v40 = vadd.f32 %v2294_v29, %v641_v39  ;;  %v2305_v41 = vpop.f32.mrb[2].mxu1 }
 0x17d   : > { %v525_v34 = vpop.f32.mrb[3].mxu0  ;;  %v645_v44 = vpop.f32.mrb[3].mxu1 }
 0x17e   : > { %v686_v35 = vadd.f32 %v2294_v29, %v525_v34  ;;  %v717_v37 = vmax.f32 %v685_v32, 0.0  ;;  %v741_v46 = vmax.f32 %v709_v40, 0.0  ;;  %v710_v47 = vadd.f32 %v2294_v29, %v645_v44 }
 0x180   : > { %v718_v38 = vmax.f32 %v686_v35, 0.0  ;;  %v742_v51 = vmax.f32 %v710_v47, 0.0 }
 0x182   : > { %v749_v42 = vpack.c.bf16 %v718_v38, %v717_v37  ;;  %v2307_v43 = vpop.f32.mrb[4].mxu0  ;;  %v2314_v53 = vpack.c.bf16 %v742_v51, %v741_v46  ;;  %v2316_v54 = vpop.f32.mrb[4].mxu1 }
 0x183   : > { %v531_v45 = vpop.f32.mrb[5].mxu0  ;;  %v651_v57 = vpop.f32.mrb[5].mxu1 }
 0x184   : > { %v687_v48 = vadd.f32 %v2294_v29, %v531_v45  ;;  %v2311_v49 = vpop.f32.mrb[6].mxu0  ;;  %1583 = vmatprep.mubr.bf16.mxu1 %v749_v42  ;;  %v711_v58 = vadd.f32 %v2294_v29, %v651_v57  ;;  %v2319_v59 = vpop.f32.mrb[6].mxu1 }
 0x185   : > { %v535_v50 = vpop.f32.mrb[7].mxu0  ;;  %v655_v62 = vpop.f32.mrb[7].mxu1 }
 0x186   : > { %v688_v52 = vadd.f32 %v2294_v29, %v535_v50  ;;  %v719_v55 = vmax.f32 %v687_v48, 0.0  ;;  %v743_v0 = vmax.f32 %v711_v58, 0.0  ;;  %v712_v1 = vadd.f32 %v2294_v29, %v655_v62 }
 0x188   : > { %v720_v56 = vmax.f32 %v688_v52, 0.0  ;;  %v744_v5 = vmax.f32 %v712_v1, 0.0 }
 0x18a   : > { %v750_v60 = vpack.c.bf16 %v720_v56, %v719_v55  ;;  %v2321_v61 = vpop.f32.mrb[8].mxu0  ;;  %v2328_v7 = vpack.c.bf16 %v744_v5, %v743_v0  ;;  %v2330_v8 = vpop.f32.mrb[8].mxu1 }
 0x18b   : > { %v541_v63 = vpop.f32.mrb[9].mxu0  ;;  %v661_v11 = vpop.f32.mrb[9].mxu1 }
 0x18c   : > { %v689_v2 = vadd.f32 %v2294_v29, %v541_v63  ;;  %v2325_v3 = vpop.f32.mrb[10].mxu0  ;;  %1584 = vmatmul.mubr.bf16.vlgmr.msra.gmra.mrb[16].mxu1 %v750_v60  ;;  %v713_v12 = vadd.f32 %v2294_v29, %v661_v11  ;;  %v2333_v13 = vpop.f32.mrb[10].mxu1 }
 0x18d   : > { %v545_v4 = vpop.f32.mrb[11].mxu0  ;;  %v665_v16 = vpop.f32.mrb[11].mxu1 }
 0x18e   : > { %v690_v6 = vadd.f32 %v2294_v29, %v545_v4  ;;  %v721_v9 = vmax.f32 %v689_v2, 0.0  ;;  %v745_v18 = vmax.f32 %v713_v12, 0.0  ;;  %v714_v19 = vadd.f32 %v2294_v29, %v665_v16 }
 0x190   : > { %v722_v10 = vmax.f32 %v690_v6, 0.0  ;;  %v746_v23 = vmax.f32 %v714_v19, 0.0 }
 0x192   : > { %v751_v14 = vpack.c.bf16 %v722_v10, %v721_v9  ;;  %v2335_v15 = vpop.f32.mrb[12].mxu0  ;;  %v2342_v25 = vpack.c.bf16 %v746_v23, %v745_v18  ;;  %v2344_v26 = vpop.f32.mrb[12].mxu1 }
 0x193   : > { %v551_v17 = vpop.f32.mrb[13].mxu0  ;;  %v671_v31 = vpop.f32.mrb[13].mxu1 }
 0x194   : > { %v691_v20 = vadd.f32 %v2294_v29, %v551_v17  ;;  %v2339_v21 = vpop.f32.mrb[14].mxu0  ;;  %1587 = vmatprep.mubr.bf16.mxu1 %v751_v14  ;;  %v715_v32 = vadd.f32 %v2294_v29, %v671_v31  ;;  %v2347_v34 = vpop.f32.mrb[14].mxu1 }
 0x195   : > { %v555_v22 = vpop.f32.mrb[15].mxu0  ;;  %v675_v38 = vpop.f32.mrb[15].mxu1 }
 0x196   : > { %v692_v24 = vadd.f32 %v2294_v29, %v555_v22  ;;  %v723_v27 = vmax.f32 %v691_v20, 0.0  ;;  %v747_v40 = vmax.f32 %v715_v32, 0.0  ;;  %v716_v42 = vadd.f32 %v2294_v29, %v675_v38 }
 0x198   : > { %v724_v28 = vmax.f32 %v692_v24, 0.0  ;;  %v748_v47 = vmax.f32 %v716_v42, 0.0 }
 0x19a   : > { %v752_v35 = vpack.c.bf16 %v724_v28, %v723_v27  ;;  %v2349_v37 = vpop.f32.mrb[16].mxu0  ;;  %v2356_v50 = vpack.c.bf16 %v748_v47, %v747_v40 }
 0x19b   : > { %v561_v39 = vpop.f32.mrb[17].mxu0 }
 0x19c   : > { %v693_v44 = vadd.f32 %v2294_v29, %v561_v39  ;;  %v2353_v45 = vpop.f32.mrb[18].mxu0  ;;  %1588 = vmatmul.mubr.bf16.gmra.mrb[20].mxu1 %v752_v35 }
 0x19d   : > { %v565_v46 = vpop.f32.mrb[19].mxu0 }
 0x19e   : > { %v694_v48 = vadd.f32 %v2294_v29, %v565_v46  ;;  %v725_v51 = vmax.f32 %v693_v44, 0.0 }
 0x1a0   : > { %v726_v52 = vmax.f32 %v694_v48, 0.0 }
 0x1a2   : > { %v753_v55 = vpack.c.bf16 %v726_v52, %v725_v51  ;;  %v2358_v56 = vpop.f32.mrb[20].mxu0 }
 0x1a3   : > { %v571_v57 = vpop.f32.mrb[21].mxu0 }
 0x1a4   : > { %v695_v58 = vadd.f32 %v2294_v29, %v571_v57  ;;  %v2361_v60 = vpop.f32.mrb[22].mxu0  ;;  %1591 = vmatprep.mubr.bf16.mxu1 %v753_v55 }
 0x1a5   : > { %v575_v62 = vpop.f32.mrb[23].mxu0 }
 0x1a6   : > { %v696_v63 = vadd.f32 %v2294_v29, %v575_v62  ;;  %v727_v0 = vmax.f32 %v695_v58, 0.0 }
 0x1a8   : > { %v728_v1 = vmax.f32 %v696_v63, 0.0 }
 0x1aa   : > { %v754_v2 = vpack.c.bf16 %v728_v1, %v727_v0  ;;  %v2364_v4 = vpop.f32.mrb[24].mxu0 }
 0x1ab   : > { %v581_v5 = vpop.f32.mrb[25].mxu0 }
 0x1ac   : > { %v697_v6 = vadd.f32 %v2294_v29, %v581_v5  ;;  %v2367_v9 = vpop.f32.mrb[26].mxu0  ;;  %1592 = vmatmul.mubr.bf16.gmra.mrb[24].mxu1 %v754_v2 }
 0x1ad   : > { %v585_v10 = vpop.f32.mrb[27].mxu0 }
 0x1ae   : > { %v698_v11 = vadd.f32 %v2294_v29, %v585_v10  ;;  %v729_v12 = vmax.f32 %v697_v6, 0.0 }
 0x1b0   : > { %v730_v14 = vmax.f32 %v698_v11, 0.0 }
 0x1b2   : > { %v755_v16 = vpack.c.bf16 %v730_v14, %v729_v12  ;;  %v2370_v17 = vpop.f32.mrb[28].mxu0 }
 0x1b3   : > { %v591_v18 = vpop.f32.mrb[29].mxu0 }
 0x1b4   : > { %v699_v19 = vadd.f32 %v2294_v29, %v591_v18  ;;  %v2373_v20 = vpop.f32.mrb[30].mxu0  ;;  %1595 = vmatprep.mubr.bf16.mxu1 %v755_v16 }
 0x1b5   : > { %v595_v22 = vpop.f32.mrb[31].mxu0 }
 0x1b6   : > { %v700_v23 = vadd.f32 %v2294_v29, %v595_v22  ;;  %v731_v24 = vmax.f32 %v699_v19, 0.0 }
 0x1b8   : > { %v732_v27 = vmax.f32 %v700_v23, 0.0 }
 0x1ba   : > { %v756_v28 = vpack.c.bf16 %v732_v27, %v731_v24  ;;  %v2376_v31 = vpop.f32.mrb[32].mxu0 }
 0x1bb   : > { %v601_v32 = vpop.f32.mrb[33].mxu0 }
 0x1bc   : > { %v701_v35 = vadd.f32 %v2294_v29, %v601_v32  ;;  %v2379_v38 = vpop.f32.mrb[34].mxu0  ;;  %1596 = vmatmul.mubr.bf16.gmra.mrb[28].mxu1 %v756_v28 }
 0x1bd   : > { %v605_v39 = vpop.f32.mrb[35].mxu0 }
 0x1be   : > { %v702_v40 = vadd.f32 %v2294_v29, %v605_v39  ;;  %v733_v42 = vmax.f32 %v701_v35, 0.0 }
 0x1c0   : > { %v734_v44 = vmax.f32 %v702_v40, 0.0 }
 0x1c2   : > { %v757_v46 = vpack.c.bf16 %v734_v44, %v733_v42  ;;  %v2382_v47 = vpop.f32.mrb[36].mxu0  ;;  %v2405_v42 = vld [vmem:[#allocation10] ss:$0 sm:$0xff] }
 0x1c3   : > { %v611_v48 = vpop.f32.mrb[37].mxu0 }
 0x1c4   : > { %v703_v51 = vadd.f32 %v2294_v29, %v611_v48  ;;  %v2385_v52 = vpop.f32.mrb[38].mxu0  ;;  %1599 = vmatprep.mubr.bf16.mxu1 %v757_v46 }
 0x1c5   : > { %v615_v55 = vpop.f32.mrb[39].mxu0 }
 0x1c6   : > { %v704_v57 = vadd.f32 %v2294_v29, %v615_v55  ;;  %v735_v58 = vmax.f32 %v703_v51, 0.0 }
 0x1c8   : > { %v736_v62 = vmax.f32 %v704_v57, 0.0 }
 0x1ca   : > { %v758_v63 = vpack.c.bf16 %v736_v62, %v735_v58  ;;  %v2388_v0 = vpop.f32.mrb[40].mxu0 }
 0x1cb   : > { %v621_v1 = vpop.f32.mrb[41].mxu0 }
 0x1cc   : > { %v705_v2 = vadd.f32 %v2294_v29, %v621_v1  ;;  %v2391_v5 = vpop.f32.mrb[42].mxu0  ;;  %1600 = vmatmul.mubr.bf16.gmra.mrb[32].mxu1 %v758_v63 }
 0x1cd   : > { %v625_v6 = vpop.f32.mrb[43].mxu0 }
 0x1ce   : > { %v706_v10 = vadd.f32 %v2294_v29, %v625_v6  ;;  %v737_v11 = vmax.f32 %v705_v2, 0.0 }
 0x1d0   : > { %v738_v12 = vmax.f32 %v706_v10, 0.0 }
 0x1d2   : > { %v759_v14 = vpack.c.bf16 %v738_v12, %v737_v11  ;;  %v2394_v16 = vpop.f32.mrb[44].mxu0 }
 0x1d3   : > { %v631_v18 = vpop.f32.mrb[45].mxu0 }
 0x1d4   : > { %v707_v19 = vadd.f32 %v2294_v29, %v631_v18  ;;  %v2397_v22 = vpop.f32.mrb[46].mxu0  ;;  %1603 = vmatprep.mubr.bf16.mxu1 %v759_v14 }
 0x1d5   : > { %v635_v23 = vpop.f32.mrb[47].mxu0 }
 0x1d6   : > { %v708_v24 = vadd.f32 %v2294_v29, %v635_v23  ;;  %v739_v27 = vmax.f32 %v707_v19, 0.0 }
 0x1d8   : > { %v740_v28 = vmax.f32 %v708_v24, 0.0 }
 0x1da   : > { %v760_v32 = vpack.c.bf16 %v740_v28, %v739_v27 }
 0x1dc   : > { %1604 = vmatmul.mubr.bf16.gmra.mrb[36].mxu1 %v760_v32 }
 0x1dd   : > { %1607 = vmatprep.mubr.bf16.mxu1 %v2314_v53 }
 0x1e4   : > { %1608 = vmatmul.mubr.bf16.gmra.mrb[40].mxu1 %v2328_v7 }
 0x1e5   : > { %1611 = vmatprep.mubr.bf16.mxu1 %v2342_v25 }
 0x1ec   : > { %1612 = vmatmul.mubr.bf16.gmra.mrb[44].mxu1 %v2356_v50 }
 0x25f   : > { %v1585_v35 = vpop.f32.mrb[16].mxu1 }
 0x260   : > { %v872_v39 = vadd.f32 %v1585_v35, %v2307_v43  ;;  %v863_v40 = vpop.f32.mrb[17].mxu1 }
 0x261   : > { %v864_v29 = vadd.f32 %v863_v40, %v2296_v30  ;;  %v1586_v44 = vpop.f32.mrb[18].mxu1 }
 0x262   : > { %v875_v46 = vadd.f32 %v1586_v44, %v2311_v49  ;;  %v866_v48 = vpop.f32.mrb[19].mxu1  ;;  %v999_v7 = vadd.f32 %v2405_v42, %v872_v39 }
 0x263   : > { %v867_v53 = vadd.f32 %v866_v48, %v2299_v33  ;;  %v997_v50 = vadd.f32 %v2405_v42, %v864_v29 }
 0x264   : > { %v1000_v25 = vadd.f32 %v2405_v42, %v875_v46 }
 0x265   : > { %v998_v51 = vadd.f32 %v2405_v42, %v867_v53 }
 0x266   : > { %v1456_v43 = vpack.c.bf16 %v1000_v25, %v999_v7 }
 0x267   : > { %v1451_v55 = vpack.c.bf16 %v998_v51, %v997_v50 }
 0x268   : > { %1528 = vst [vmem:[%s2416_s24 + $0x8] sm:$0xff] %v1456_v43  }
 0x269   : > { %1452 = vst [vmem:[%s2416_s24] sm:$0xff] %v1451_v55  }
 0x26f   : > { %v1589_v30 = vpop.f32.mrb[20].mxu1 }
 0x270   : > { %v888_v33 = vadd.f32 %v1589_v30, %v2335_v15  ;;  %v879_v49 = vpop.f32.mrb[21].mxu1 }
 0x271   : > { %v880_v57 = vadd.f32 %v879_v49, %v2321_v61  ;;  %v1590_v58 = vpop.f32.mrb[22].mxu1 }
 0x272   : > { %v891_v62 = vadd.f32 %v1590_v58, %v2339_v21  ;;  %v882_v63 = vpop.f32.mrb[23].mxu1  ;;  %v1003_v2 = vadd.f32 %v2405_v42, %v888_v33 }
 0x273   : > { %v883_v1 = vadd.f32 %v882_v63, %v2325_v3  ;;  %v1001_v10 = vadd.f32 %v2405_v42, %v880_v57 }
 0x274   : > { %v1004_v6 = vadd.f32 %v2405_v42, %v891_v62 }
 0x275   : > { %v1002_v11 = vadd.f32 %v2405_v42, %v883_v1 }
 0x276   : > { %v1466_v12 = vpack.c.bf16 %v1004_v6, %v1003_v2 }
 0x277   : > { %v1461_v14 = vpack.c.bf16 %v1002_v11, %v1001_v10 }
 0x278   : > { %1530 = vst [vmem:[%s2416_s24 + $0x18] sm:$0xff] %v1466_v12  }
 0x279   : > { %1529 = vst [vmem:[%s2416_s24 + $0x10] sm:$0xff] %v1461_v14  }
 0x27f   : > { %v1593_v61 = vpop.f32.mrb[24].mxu1 }
 0x280   : > { %v904_v15 = vadd.f32 %v1593_v61, %v2358_v56  ;;  %v895_v21 = vpop.f32.mrb[25].mxu1 }
 0x281   : > { %v896_v3 = vadd.f32 %v895_v21, %v2349_v37  ;;  %v1594_v18 = vpop.f32.mrb[26].mxu1 }
 0x282   : > { %v907_v19 = vadd.f32 %v1594_v18, %v2361_v60  ;;  %v898_v23 = vpop.f32.mrb[27].mxu1  ;;  %v1007_v27 = vadd.f32 %v2405_v42, %v904_v15 }
 0x283   : > { %v899_v24 = vadd.f32 %v898_v23, %v2353_v45  ;;  %v1005_v32 = vadd.f32 %v2405_v42, %v896_v3 }
 0x284   : > { %v1008_v28 = vadd.f32 %v2405_v42, %v907_v19 }
 0x285   : > { %v1006_v35 = vadd.f32 %v2405_v42, %v899_v24 }
 0x286   : > { %v1476_v39 = vpack.c.bf16 %v1008_v28, %v1007_v27 }
 0x287   : > { %v1471_v40 = vpack.c.bf16 %v1006_v35, %v1005_v32 }
 0x288   : > { %1532 = vst [vmem:[%s2416_s24 + $0x28] sm:$0xff] %v1476_v39  }
 0x289   : > { %1531 = vst [vmem:[%s2416_s24 + $0x20] sm:$0xff] %v1471_v40  }
 0x28f   : > { %v1597_v37 = vpop.f32.mrb[28].mxu1 }
 0x290   : > { %v920_v56 = vadd.f32 %v1597_v37, %v2370_v17  ;;  %v911_v60 = vpop.f32.mrb[29].mxu1 }
 0x291   : > { %v912_v45 = vadd.f32 %v911_v60, %v2364_v4  ;;  %v1598_v29 = vpop.f32.mrb[30].mxu1 }
 0x292   : > { %v923_v44 = vadd.f32 %v1598_v29, %v2373_v20  ;;  %v914_v46 = vpop.f32.mrb[31].mxu1  ;;  %v1011_v53 = vadd.f32 %v2405_v42, %v920_v56 }
 0x293   : > { %v915_v48 = vadd.f32 %v914_v46, %v2367_v9  ;;  %v1009_v25 = vadd.f32 %v2405_v42, %v912_v45 }
 0x294   : > { %v1012_v7 = vadd.f32 %v2405_v42, %v923_v44 }
 0x295   : > { %v1010_v50 = vadd.f32 %v2405_v42, %v915_v48 }
 0x296   : > { %v1486_v51 = vpack.c.bf16 %v1012_v7, %v1011_v53 }
 0x297   : > { %v1481_v43 = vpack.c.bf16 %v1010_v50, %v1009_v25 }
 0x298   : > { %1534 = vst [vmem:[%s2416_s24 + $0x38] sm:$0xff] %v1486_v51  }
 0x299   : > { %1533 = vst [vmem:[%s2416_s24 + $0x30] sm:$0xff] %v1481_v43  }
 0x29f   : > { %v1601_v4 = vpop.f32.mrb[32].mxu1 }
 0x2a0   : > { %v936_v17 = vadd.f32 %v1601_v4, %v2382_v47  ;;  %v927_v20 = vpop.f32.mrb[33].mxu1 }
 0x2a1   : > { %v928_v9 = vadd.f32 %v927_v20, %v2376_v31  ;;  %v1602_v55 = vpop.f32.mrb[34].mxu1 }
 0x2a2   : > { %v939_v30 = vadd.f32 %v1602_v55, %v2385_v52  ;;  %v930_v33 = vpop.f32.mrb[35].mxu1  ;;  %v1015_v57 = vadd.f32 %v2405_v42, %v936_v17 }
 0x2a3   : > { %v931_v49 = vadd.f32 %v930_v33, %v2379_v38  ;;  %v1013_v62 = vadd.f32 %v2405_v42, %v928_v9 }
 0x2a4   : > { %v1016_v58 = vadd.f32 %v2405_v42, %v939_v30 }
 0x2a5   : > { %v1014_v63 = vadd.f32 %v2405_v42, %v931_v49 }
 0x2a6   : > { %v1496_v1 = vpack.c.bf16 %v1016_v58, %v1015_v57 }
 0x2a7   : > { %v1491_v2 = vpack.c.bf16 %v1014_v63, %v1013_v62 }
 0x2a8   : > { %1536 = vst [vmem:[%s2416_s24 + $0x48] sm:$0xff] %v1496_v1  }
 0x2a9   : > { %1535 = vst [vmem:[%s2416_s24 + $0x40] sm:$0xff] %v1491_v2  }
 0x2af   : > { %v1605_v31 = vpop.f32.mrb[36].mxu1 }
 0x2b0   : > { %v952_v47 = vadd.f32 %v1605_v31, %v2394_v16  ;;  %v943_v52 = vpop.f32.mrb[37].mxu1 }
 0x2b1   : > { %v944_v38 = vadd.f32 %v943_v52, %v2388_v0  ;;  %v1606_v6 = vpop.f32.mrb[38].mxu1 }
 0x2b2   : > { %v955_v10 = vadd.f32 %v1606_v6, %v2397_v22  ;;  %v946_v11 = vpop.f32.mrb[39].mxu1  ;;  %v1019_v14 = vadd.f32 %v2405_v42, %v952_v47 }
 0x2b3   : > { %v947_v12 = vadd.f32 %v946_v11, %v2391_v5  ;;  %v1017_v15 = vadd.f32 %v2405_v42, %v944_v38 }
 0x2b4   : > { %v1020_v61 = vadd.f32 %v2405_v42, %v955_v10 }
 0x2b5   : > { %v1018_v21 = vadd.f32 %v2405_v42, %v947_v12 }
 0x2b6   : > { %v1506_v3 = vpack.c.bf16 %v1020_v61, %v1019_v14 }
 0x2b7   : > { %v1501_v16 = vpack.c.bf16 %v1018_v21, %v1017_v15  ;;  %v1609_v18 = vpop.f32.mrb[40].mxu1 }
 0x2b8   : > { %1538 = vst [vmem:[%s2416_s24 + $0x58] sm:$0xff] %v1506_v3   ;;  %v968_v0 = vadd.f32 %v1609_v18, %v2316_v54  ;;  %v959_v19 = vpop.f32.mrb[41].mxu1 }
 0x2b9   : > { %1537 = vst [vmem:[%s2416_s24 + $0x50] sm:$0xff] %v1501_v16   ;;  %v960_v5 = vadd.f32 %v959_v19, %v2302_v36  ;;  %v1610_v22 = vpop.f32.mrb[42].mxu1 }
 0x2ba   : > { %v971_v23 = vadd.f32 %v1610_v22, %v2319_v59  ;;  %v962_v24 = vpop.f32.mrb[43].mxu1  ;;  %v1023_v28 = vadd.f32 %v2405_v42, %v968_v0 }
 0x2bb   : > { %v963_v27 = vadd.f32 %v962_v24, %v2305_v41  ;;  %v1021_v35 = vadd.f32 %v2405_v42, %v960_v5 }
 0x2bc   : > { %v1024_v32 = vadd.f32 %v2405_v42, %v971_v23 }
 0x2bd   : > { %v1022_v54 = vadd.f32 %v2405_v42, %v963_v27 }
 0x2be   : > { %v1516_v39 = vpack.c.bf16 %v1024_v32, %v1023_v28 }
 0x2bf   : > { %v1511_v40 = vpack.c.bf16 %v1022_v54, %v1021_v35  ;;  %v1613_v37 = vpop.f32.mrb[44].mxu1 }
 0x2c0   : > { %1540 = vst [vmem:[%s2416_s24 + $0x68] sm:$0xff] %v1516_v39   ;;  %v984_v36 = vadd.f32 %v1613_v37, %v2344_v26  ;;  %v975_v59 = vpop.f32.mrb[45].mxu1 }
 0x2c1   : > { %1539 = vst [vmem:[%s2416_s24 + $0x60] sm:$0xff] %v1511_v40   ;;  %v976_v41 = vadd.f32 %v975_v59, %v2330_v8  ;;  %v1614_v56 = vpop.f32.mrb[46].mxu1 }
 0x2c2   : > { %v987_v60 = vadd.f32 %v1614_v56, %v2347_v34  ;;  %v978_v45 = vpop.f32.mrb[47].mxu1  ;;  %v1027_v44 = vadd.f32 %v2405_v42, %v984_v36 }
 0x2c3   : > { %v979_v29 = vadd.f32 %v978_v45, %v2333_v13  ;;  %v1025_v46 = vadd.f32 %v2405_v42, %v976_v41 }
 0x2c4   : > { %v1028_v26 = vadd.f32 %v2405_v42, %v987_v60 }
 0x2c5   : > { %v1026_v48 = vadd.f32 %v2405_v42, %v979_v29 }
 0x2c6   : > { %v1526_v8 = vpack.c.bf16 %v1028_v26, %v1027_v44 }
 0x2c7   : > { %v1521_v13 = vpack.c.bf16 %v1026_v48, %v1025_v46 }
 0x2c8   : > { %1542 = vst [vmem:[%s2416_s24 + $0x78] sm:$0xff] %v1526_v8  }
 0x2c9   : > { %1541 = vst [vmem:[%s2416_s24 + $0x70] sm:$0xff] %v1521_v13  }
 0x2ca   : > { %1898 = shalt.err (!%p1895_p13)
}
 0x2cb   : > { %s1899_s30 = scalar_lea.hbm %s2493_s16, 2048  ;;  %s1903_s13 = scalar_lea.hbm %s2546_s5, 4096 }
 0x2cc   : > { %p1900_p9 = scmp.ne.s32.totalorder %s2493_s16, %s1899_s30  ;;  %p1904_p6 = scmp.lt.u32.totalorder %s2493_s16, %s2546_s5 }
 0x2cd   : > { %p1905_p10 = scmp.lt.u32.totalorder %s1903_s13, %s1899_s30  ;;  %p1907_p4 = scmp.lt.u32.totalorder %s1899_s30, %s2493_s16 }
 0x2ce   : > { %p1901_p0 = pnand %p1900_p9, %p2174_p8 }
 0x2cf   : > { %p1906_p3 = por %p1905_p10, %p1904_p6 }
 0x2d0   : > { %p1902_p11 = pneg %p1901_p0 }
 0x2d1   : > { %p1908_p5 = por %p1907_p4, %p1906_p3 }
 0x2d3   : > { %p1909_p7 = pnand %p1908_p5, %p1902_p11 }
 0x2d5   : > { %1912 = shalt.err (!%p1909_p7)
}
 0x2d6   : > { %s1972_s26 = smov 64   ;;  %s1973_s15 = smov 4  }
 0x2d7   : > { %1637 = dma.vmem_to_hbm [thread:$0]  (%p2174_p8), %s2495_s14, 2048, %s2493_s16, %s1190_s22, %s1972_s26, %s1972_s26, %s1973_s15  }
 0x2d8 PF: > { %s1218_s6 = sand.u32 1, %s1947_s18   ;;  %p2564_p12 = scmp.ne.s32.totalorder %s2551_s25, 0 }
 0x2d9   : > { %p2565_p2 = scmp.ge.s32.totalorder %s1959_s21, 2  ;;  %s1219_s23 = scalar_lea.sflag [#allocation4], %s1218_s6 }
 0x2db   : > { %p1657_p1 = pnand %p2565_p2, %p2564_p12 }
 0x2dd   : > { %1942 = dma.done.wait (!%p1657_p1), %s1219_s23, 2048  }
 0x2de   : > { %1944 = vsyncadd (!%p1657_p1), %s1219_s23, 4294965248  ;;  %p20_p13 = scmp.ge.s32.totalorder %s2161_s12, 4   ;;  %s2566_s18 = smov %s1951_s19 }
 0x2df   : > { %s2567_s19 = smov %s1955_s20  ;;  %s2568_s20 = smov %s2170_s8 }
 0x2e0   : > { %s2569_s21 = smov %s2161_s12  ;;  %22 = sbr.rel (!%p20_p13) target bundleno = 7 (0x7), region = 101 }
 0x2e7   :  { %1224 = vsyncpa [#allocation3], 1 }
 0x2e8   :  { %1226 = vsyncpa [#allocation3 + $0x1], 1 }
 0x2e9   :  { %1227 = vsyncpa [#allocation6], 1 }
 0x2ea   :  { %1228 = vsyncpa [#allocation9], 1 }
 0x2eb   :  { %1229 = vsyncpa [#allocation4], 1 }
 0x2ec   :  { %1231 = vsyncpa [#allocation4 + $0x1], 1 }

</bundles_post_ra>
